<compile_context>
chip_gen: v7x
topology: tpu7x:2x2x1
jax: 0.10.0
libtpu: 0.0.40
codegen_flags: <defaults>
</compile_context>

<pallas_src>
import numpy as np

import jax
import jax.numpy as jnp
from jax import lax
from jax.experimental import pallas as pl
from jax.experimental.pallas import tpu as pltpu


# ---------------------------------------------------------------------------
# KL-regularized soft-rank projection (log domain), exact, vectorized (XLA).
# ---------------------------------------------------------------------------
def _kl_soft_rank_projection(values, regularization_strength):
    """Per-row log-domain KL soft-rank projection: soft_rank = exp(result).

    Matches fast-soft-sort soft_rank(..., regularization='kl') exactly: sort
    descending, isotonic regression with KL pooled block values
    (logsumexp(s[k..l]) - log(sum w[k..l])), primal = s - dual, un-permute.
    The PAV solution is evaluated through its equivalent max-min formula so it
    vectorizes over rows (O(rows * D^2) work/memory).
    """
    rows, d = values.shape
    theta = values.astype(jnp.float32) * jnp.float32(1.0 / regularization_strength)

    order = jnp.argsort(-theta, axis=-1)                     # descending per row
    s = jnp.take_along_axis(theta, order, axis=-1)           # (rows, d)

    idx = jnp.arange(d)
    k_le_l = idx[:, None] <= idx[None, :]                    # valid block mask (k, l)

    # log of sum of permutahedron weights w = [d, d-1, ..., 1] over block [k..l]
    w = jnp.arange(d, 0, -1, dtype=jnp.float32)
    cw = jnp.cumsum(w)
    cw_prev = jnp.concatenate([jnp.zeros((1,), jnp.float32), cw[:-1]])
    w_block = cw[None, :] - cw_prev[:, None]
    log_w_block = jnp.log(jnp.where(k_le_l, w_block, 1.0))

    # logsumexp of s over block [k..l], anchored at the block max s_k (stable)
    e = jnp.where(k_le_l[None],
                  jnp.exp(jnp.minimum(s[:, None, :] - s[:, :, None], 0.0)), 0.0)
    c = jnp.cumsum(e, axis=-1)                               # (rows, k, l)
    lse_s_block = s[:, :, None] + jnp.log(jnp.maximum(c, 1e-30))

    # pooled block minimizer; max-min (PAV-equivalent) decreasing isotonic fit
    m = jnp.where(k_le_l[None], lse_s_block - log_w_block[None], jnp.inf)
    a = lax.cummin(m, axis=1)                                # min over k <= i
    v = jnp.max(jnp.where(k_le_l[None], a, -jnp.inf), axis=-1)   # max over l >= i

    primal = s - v                                           # projection (sorted order)
    inv = jnp.argsort(order, axis=-1)
    return jnp.take_along_axis(primal, inv, axis=-1)         # back to input order


# ---------------------------------------------------------------------------
# Pallas kernel: ranks = exp(p), Pearson correlation per row, loss = 1 - corr.
# ---------------------------------------------------------------------------
def _soft_spearman_loss_kernel(p1_ref, p2_ref, o_ref):
    # p1_ref, p2_ref: (TM, D) log-domain projections; o_ref: (1, TM) loss.
    d = p1_ref.shape[-1]
    center = jnp.float32((d + 1) * 0.5)   # exact mean of any point of the permutahedron
    r1 = jnp.exp(p1_ref[...].astype(jnp.float32)) - center
    r2 = jnp.exp(p2_ref[...].astype(jnp.float32)) - center

    ones_row = jnp.ones((1, d), dtype=jnp.float32)
    contract_last = (((1,), (1,)), ((), ()))

    def row_sums(mat):  # (TM, D) -> (1, TM): lane reduction on the (idle) MXU
        return lax.dot_general(ones_row, mat, contract_last,
                               preferred_element_type=jnp.float32)

    # Single pass over the data: five moments, all produced lane-major.
    s1, s2 = row_sums(r1), row_sums(r2)
    s11, s22, s12 = row_sums(r1 * r1), row_sums(r2 * r2), row_sums(r1 * r2)

    inv_d = jnp.float32(1.0 / d)
    cov = s12 - s1 * s2 * inv_d
    var1 = s11 - s1 * s1 * inv_d
    var2 = s22 - s2 * s2 * inv_d
    denom = jnp.sqrt(jnp.maximum(var1 * var2, jnp.float32(1e-30)))
    o_ref[...] = (1.0 - cov / denom).astype(o_ref.dtype)     # lane-dense store


def _pick_row_tile(rows, d, vmem_budget_bytes=8 << 20):
    """Row tile TM: BlockSpec double-buffers each input -> ~2*2*TM*D*4 bytes."""
    if rows <= 128:
        return rows, rows                # single full-extent block (tiny inputs)
    cap = vmem_budget_bytes // (2 * 2 * d * 4)
    tm = 128
    for cand in (1024, 512, 256):
        if cand <= cap:
            tm = cand
            break
    rows_pad = ((rows + tm - 1) // tm) * tm
    return rows_pad, tm


def soft_spearman(x1, x2, *, regularization_strength=0.1, regularization="kl"):
    """Forward pass of SoftSpearman. x1, x2: (n_sents, trg_length, D)."""
    assert regularization == "kl", "only the module default ('kl') is implemented"
    assert x1.shape == x2.shape and x1.ndim == 3
    n_sents, trg_length, d = x1.shape
    rows = n_sents * trg_length

    # TODO(synk): per-row sort + PAV isotonic regression (data-dependent,
    # sequential pooling) has no clean Pallas equivalent; the KL soft-rank
    # projection is computed here with exact vectorized XLA ops instead.
    p1 = _kl_soft_rank_projection(x1.reshape(rows, d), regularization_strength)
    p2 = _kl_soft_rank_projection(x2.reshape(rows, d), regularization_strength)

    rows_pad, tm = _pick_row_tile(rows, d)
    if rows_pad != rows:
        pad = ((0, rows_pad - rows), (0, 0))
        p1 = jnp.pad(p1, pad)
        p2 = jnp.pad(p2, pad)

    loss_flat = pl.pallas_call(
        _soft_spearman_loss_kernel,
        out_shape=jax.ShapeDtypeStruct((1, rows_pad), jnp.float32),
        grid_spec=pltpu.PrefetchScalarGridSpec(
            num_scalar_prefetch=0,
            grid=(rows_pad // tm,),
            in_specs=[
                pl.BlockSpec((tm, d), lambda i: (i, 0)),
                pl.BlockSpec((tm, d), lambda i: (i, 0)),
            ],
            out_specs=pl.BlockSpec((1, tm), lambda i: (0, i)),
        ),
        compiler_params=pltpu.CompilerParams(
            dimension_semantics=("parallel",)),
    )(p1, p2)

    return loss_flat[0, :rows].reshape(n_sents, trg_length)


# ---------------------------------------------------------------------------
# float64 reference (sequential PAV, mirrors the fast-soft-sort 'kl' path).
# ---------------------------------------------------------------------------
def _soft_rank_kl_ref(row, regularization_strength):
    theta = np.asarray(row, dtype=np.float64) / regularization_strength
    n = theta.shape[0]
    perm = np.argsort(theta)[::-1]
    s = theta[perm]
    logw = np.log(np.arange(n, 0, -1, dtype=np.float64))
    lse_y, lse_w, sizes, vals = [], [], [], []
    for j in range(n):
        cy, cwt, cs = s[j], logw[j], 1
        cv = cy - cwt
        while vals and vals[-1] <= cv:          # pool adjacent violators
            cy = np.logaddexp(cy, lse_y.pop())
            cwt = np.logaddexp(cwt, lse_w.pop())
            cs += sizes.pop()
            vals.pop()
            cv = cy - cwt
        lse_y.append(cy); lse_w.append(cwt); sizes.append(cs); vals.append(cv)
    dual = np.concatenate([np.full(sz, val) for sz, val in zip(sizes, vals)])
    primal = s - dual
    return np.exp(primal[np.argsort(perm)])


def _soft_spearman_ref(x1, x2, regularization_strength):
    x1 = np.asarray(x1, dtype=np.float64)
    x2 = np.asarray(x2, dtype=np.float64)
    n_sents, trg_length, d = x1.shape
    a, b = x1.reshape(-1, d), x2.reshape(-1, d)
    out = np.zeros(a.shape[0])
    for i in range(a.shape[0]):
        r1 = _soft_rank_kl_ref(a[i], regularization_strength)
        r2 = _soft_rank_kl_ref(b[i], regularization_strength)
        r1c, r2c = r1 - r1.mean(), r2 - r2.mean()
        out[i] = 1.0 - (r1c * r2c).sum() / (np.linalg.norm(r1c) * np.linalg.norm(r2c))
    return out.reshape(n_sents, trg_length)


if __name__ == "__main__":
    n_sents, trg_length, dim = 2, 8, 128
    key = jax.random.PRNGKey(0)
    k1, k2 = jax.random.split(key)
    x1 = jax.random.normal(k1, (n_sents, trg_length, dim), dtype=jnp.float32)
    x2 = jax.random.normal(k2, (n_sents, trg_length, dim), dtype=jnp.float32)

    loss = jax.block_until_ready(jax.jit(soft_spearman)(x1, x2))
    assert loss.shape == (n_sents, trg_length)
    assert bool(jnp.all(jnp.isfinite(loss)))

    ref = _soft_spearman_ref(np.asarray(x1), np.asarray(x2), 0.1)
    err = float(np.max(np.abs(np.asarray(loss, dtype=np.float64) - ref)))
    assert err < 2e-3, f"mismatch vs sequential-PAV reference, max abs err = {err}"
    print("KERNEL_OK")
</pallas_src>

<mosaic_0001>
module attributes {stable_mosaic.version = 11 : i64} {
  func.func private @main(%arg0: i32) attributes {dimension_semantics = [#tpu.dimension_semantics<core_parallel>], iteration_bounds = array<i64: 2>, tpu.core_type = #tpu.core_type<sc_scalar_subcore>, window_params = []} {
    return
  }
}

module attributes {stable_mosaic.version = 11 : i64} {
  func.func private @main(%arg0: i32) attributes {dimension_semantics = [#tpu.dimension_semantics<core_parallel>], iteration_bounds = array<i64: 2>, tpu.core_type = #tpu.core_type<sc_scalar_subcore>, window_params = []} {
    return
  }
}

module attributes {stable_mosaic.version = 11 : i64} {
  func.func @_soft_spearman_loss_kernel(%arg0: i32, %arg1: memref<16x128xf32, #tpu.memory_space<vmem>>, %arg2: memref<16x128xf32, #tpu.memory_space<vmem>>, %arg3: memref<1x16xf32, #tpu.memory_space<vmem>>) attributes {dimension_semantics = [#tpu.dimension_semantics<parallel>], iteration_bounds = array<i64: 1>, scalar_prefetch = 0 : i64, scratch_operands = 0 : i64, tpu.core_type = #tpu.core_type<tc>, window_params = [{transform_indices = @transform_0, window_bounds = array<i64: 16, 128>}, {transform_indices = @transform_1, window_bounds = array<i64: 16, 128>}, {transform_indices = @transform_2, window_bounds = array<i64: 1, 16>}]} {
    %c0 = arith.constant 0 : index
    %c0_0 = arith.constant 0 : index
    %0 = vector.load %arg1[%c0, %c0_0] : memref<16x128xf32, #tpu.memory_space<vmem>>, vector<16x128xf32>
    %1 = math.exp %0 : vector<16x128xf32>
    %cst = arith.constant 6.450000e+01 : f32
    %2 = vector.broadcast %cst : f32 to vector<16x128xf32>
    %3 = arith.subf %1, %2 : vector<16x128xf32>
    %c0_1 = arith.constant 0 : index
    %c0_2 = arith.constant 0 : index
    %4 = vector.load %arg2[%c0_1, %c0_2] : memref<16x128xf32, #tpu.memory_space<vmem>>, vector<16x128xf32>
    %5 = math.exp %4 : vector<16x128xf32>
    %cst_3 = arith.constant 6.450000e+01 : f32
    %6 = vector.broadcast %cst_3 : f32 to vector<16x128xf32>
    %7 = arith.subf %5, %6 : vector<16x128xf32>
    %cst_4 = arith.constant 1.000000e+00 : f32
    %8 = vector.broadcast %cst_4 : f32 to vector<1x128xf32>
    %cst_5 = arith.constant dense<0.000000e+00> : vector<1x16xf32>
    %9 = tpu.matmul %8, %3, %cst_5 {dimension_numbers = #tpu.dot_dimension_numbers<[1], [1], [0], [0], [0, 0, 1, 0], [], []>} : vector<1x128xf32>, vector<16x128xf32>, vector<1x16xf32> -> vector<1x16xf32>
    %cst_6 = arith.constant dense<0.000000e+00> : vector<1x16xf32>
    %10 = tpu.matmul %8, %7, %cst_6 {dimension_numbers = #tpu.dot_dimension_numbers<[1], [1], [0], [0], [0, 0, 1, 0], [], []>} : vector<1x128xf32>, vector<16x128xf32>, vector<1x16xf32> -> vector<1x16xf32>
    %11 = arith.mulf %3, %3 : vector<16x128xf32>
    %cst_7 = arith.constant dense<0.000000e+00> : vector<1x16xf32>
    %12 = tpu.matmul %8, %11, %cst_7 {dimension_numbers = #tpu.dot_dimension_numbers<[1], [1], [0], [0], [0, 0, 1, 0], [], []>} : vector<1x128xf32>, vector<16x128xf32>, vector<1x16xf32> -> vector<1x16xf32>
    %13 = arith.mulf %7, %7 : vector<16x128xf32>
    %cst_8 = arith.constant dense<0.000000e+00> : vector<1x16xf32>
    %14 = tpu.matmul %8, %13, %cst_8 {dimension_numbers = #tpu.dot_dimension_numbers<[1], [1], [0], [0], [0, 0, 1, 0], [], []>} : vector<1x128xf32>, vector<16x128xf32>, vector<1x16xf32> -> vector<1x16xf32>
    %15 = arith.mulf %3, %7 : vector<16x128xf32>
    %cst_9 = arith.constant dense<0.000000e+00> : vector<1x16xf32>
    %16 = tpu.matmul %8, %15, %cst_9 {dimension_numbers = #tpu.dot_dimension_numbers<[1], [1], [0], [0], [0, 0, 1, 0], [], []>} : vector<1x128xf32>, vector<16x128xf32>, vector<1x16xf32> -> vector<1x16xf32>
    %17 = arith.mulf %9, %10 : vector<1x16xf32>
    %cst_10 = arith.constant 7.812500e-03 : f32
    %18 = vector.broadcast %cst_10 : f32 to vector<1x16xf32>
    %19 = arith.mulf %17, %18 : vector<1x16xf32>
    %20 = arith.subf %16, %19 : vector<1x16xf32>
    %21 = arith.mulf %9, %9 : vector<1x16xf32>
    %cst_11 = arith.constant 7.812500e-03 : f32
    %22 = vector.broadcast %cst_11 : f32 to vector<1x16xf32>
    %23 = arith.mulf %21, %22 : vector<1x16xf32>
    %24 = arith.subf %12, %23 : vector<1x16xf32>
    %25 = arith.mulf %10, %10 : vector<1x16xf32>
    %cst_12 = arith.constant 7.812500e-03 : f32
    %26 = vector.broadcast %cst_12 : f32 to vector<1x16xf32>
    %27 = arith.mulf %25, %26 : vector<1x16xf32>
    %28 = arith.subf %14, %27 : vector<1x16xf32>
    %29 = arith.mulf %24, %28 : vector<1x16xf32>
    %cst_13 = arith.constant 1.000000e-30 : f32
    %30 = vector.broadcast %cst_13 : f32 to vector<1x16xf32>
    %31 = arith.maximumf %29, %30 : vector<1x16xf32>
    %32 = math.sqrt %31 : vector<1x16xf32>
    %33 = arith.divf %20, %32 : vector<1x16xf32>
    %cst_14 = arith.constant 1.000000e+00 : f32
    %34 = vector.broadcast %cst_14 : f32 to vector<1x16xf32>
    %35 = arith.subf %34, %33 : vector<1x16xf32>
    %c0_15 = arith.constant 0 : index
    %c0_16 = arith.constant 0 : index
    %36 = vector.load %arg3[%c0_15, %c0_16] : memref<1x16xf32, #tpu.memory_space<vmem>>, vector<1x16xf32>
    tpu.vector_store %arg3[%c0_15, %c0_16], %35 {strides = array<i32>} : memref<1x16xf32, #tpu.memory_space<vmem>>, vector<1x16xf32>,
    return
  }
  func.func @transform_0(%arg0: i32) -> (i32, i32) {
    %c0_i32 = arith.constant 0 : i32
    %c0_i32_0 = arith.constant 0 : i32
    return %arg0, %c0_i32 : i32, i32
  }
  func.func @transform_1(%arg0: i32) -> (i32, i32) {
    %c0_i32 = arith.constant 0 : i32
    %c0_i32_0 = arith.constant 0 : i32
    return %arg0, %c0_i32 : i32, i32
  }
  func.func @transform_2(%arg0: i32) -> (i32, i32) {
    %c0_i32 = arith.constant 0 : i32
    %c0_i32_0 = arith.constant 0 : i32
    return %c0_i32, %arg0 : i32, i32
  }
}

</mosaic_0001>

<bundles_post_ra>
// kernel: squeeze.1
= control target key start
LH: loop header
LB: loop body
LE: loop exit
PB: predicated region body
PF: predicated region fallthrough
CT: control target
= control target key end

     0   :  { %s85_s0 = inlined_call_operand.vmem [shape: f32[16], index: 0, kind: input, shape index: {}]   ;;  %s86_s1 = inlined_call_operand.hbm [shape: f32[2,8], index: 1, kind: output, shape index: {}]  }
   0x1   :  { %v5_v0 = vld [vmem:[%s85_s0] sm:$0x1] }
   0x2   :  { %2 = vsyncpa [#allocation1], 0  ;;  %6 = vst [vmem:[#allocation3] sm:$0x1] %v5_v0  ;;  %vm8_vm0 = vcmask 64512   ;;  %s58_s0 = smov 120  }
   0x3   :  { %s59_s8 = smov [#allocation0]  }
   0x4   :  { %s26_s9 = sshll.u32 %s59_s8, 4  ;;  %s27_s9 = int_to_ptr.vmem [resolvable:$true] %s26_s9 }
   0x5   :  { %s34_s10 = scalar_lea.vmem %s27_s9, 32  ;;  %p39_p1 = scmp.lt.s32.totalorder %s27_s9, %s27_s9 }
   0x6   :  { %p35_p0 = scmp.ne.s32.totalorder %s27_s9, %s34_s10  ;;  %p40_p2 = scmp.lt.s32.totalorder %s34_s10, %s34_s10 }
   0x8   :  { %p41_p3 = por %p40_p2, %p39_p1 }
   0x9   :  { %v10_v1 = vld [vmem:[#allocation3] sm:$0x1]  }
   0xa   :  { %v7_v2 = vld [vmem:[#allocation3] sm:$0x1]   ;;  %11 = vrot.lane.b32.xlu0 %v10_v1, %s58_s0  ;;  %p42_p4 = pnand %p41_p3, %p35_p0 }
   0xb   :  { %9 = vst.msk [vmem:[#allocation2] sm:$0x1] %vm8_vm0, %v7_v2  }
  0x7c   :  { %v12_v3 = vpop.permute.xlu0 %11  }
  0x7d   :  { %15 = vst.msk [vmem:[#allocation2 + $0x1] sm:$0x1] %vm8_vm0, %v12_v3  }
  0x84   :  { %v19_v4 = vld [vmem:[#allocation2] sm:$0x3] }
  0x85   :  { %21 = vst [vmem:[#allocation0] sm:$0x3] %v19_v4 }
  0x86   :  { %45 = shalt.err (!%p42_p4)
}
  0x87   :  { %s46_s13 = scalar_lea.hbm %s86_s1, 32 }
  0x88   :  { %p47_p5 = scmp.ne.s32.totalorder %s86_s1, %s46_s13  ;;  %p50_p6 = scmp.lt.u32.totalorder %s46_s13, %s86_s1 }
  0x8a   :  { %p52_p7 = pnand %p50_p6, %p47_p5 }
  0x8c   :  { %55 = shalt.err (!%p52_p7)
}
  0x8d   :  { %29 = dma.vmem_to_hbm [thread:$0]  %s27_s9, 32, %s86_s1, [#allocation1]  }
  0x8e   :  { %56 = dma.done.wait [#allocation1], 32  }
  0x8f   :  { %57 = vsyncadd [#allocation1], 4294967264 }
  0x90   :  { %31 = vsyncpa [#allocation1], 1 }

// kernel: soft_spearman.1
= control target key start
LH: loop header
LB: loop body
LE: loop exit
PB: predicated region body
PF: predicated region fallthrough
CT: control target
= control target key end

     0   :  { %v495_v0 = vmov 0.0|0.0   ;;  %vm496_vm0 = vmmov 0   ;;  %v497_v7 = vmov 0.0   ;;  %v498_v26 = vmov 1.0   ;;  %s534_s0 = inlined_call_operand.vmem [shape: f32[16,128], index: 0, kind: input, shape index: {}]   ;;  %s535_s1 = inlined_call_operand.vmem [shape: f32[16,128], index: 1, kind: input, shape index: {}]   ;;  %s536_s2 = inlined_call_operand.vmem [shape: f32[1,16], index: 2, kind: output, shape index: {}]  }
   0x1   :  { %464 = vmatprep.subr.bf16.mxu0 %v495_v0  ;;  %467 = vmatprep.subr.bf16.mxu1 %v495_v0  ;;  %v11_v1 = vld [vmem:[%s534_s0] sm:$0xff]  ;;  %v12_v2 = vld [vmem:[%s534_s0 + $0x8] sm:$0xff]  ;;  %vm404_vm3 = vcmask 122880  }
   0x2   :  { %v19_v3 = vld [vmem:[%s535_s1] sm:$0xff]  ;;  %v13_v4 = vmul.f32 1.442695, %v11_v1  ;;  %v15_v5 = vmul.f32 1.442695, %v12_v2  ;;  %v20_v6 = vld [vmem:[%s535_s1 + $0x8] sm:$0xff]  ;;  %433 = vmatprep.mubr.msk.f32.mxu0 %vm496_vm0, %v497_v7  ;;  %440 = vmatprep.mubr.msk.f32.mxu1 %vm496_vm0, %v497_v7 }
   0x3   :  { %v21_v8 = vmul.f32 1.442695, %v19_v3  ;;  %v23_v9 = vmul.f32 1.442695, %v20_v6 }
   0x4   :  { %483 = vpow2.f32 %v13_v4 }
   0x5   :  { %485 = vpow2.f32 %v15_v5 }
   0x6   :  { %487 = vpow2.f32 %v21_v8 }
   0x7   :  { %489 = vpow2.f32 %v23_v9 }
   0xe   :  { %v484_v10 = vpop.eup %483 }
   0xf   :  { %v486_v11 = vpop.eup %485  ;;  %v410_v12 = vadd.f32 -64.5, %v484_v10 }
  0x10   :  { %v488_v13 = vpop.eup %487  ;;  %v411_v14 = vadd.f32 -64.5, %v486_v11 }
  0x11   :  { %v490_v15 = vpop.eup %489  ;;  %v412_v16 = vadd.f32 -64.5, %v488_v13  ;;  %v167_v20 = vmul.f32 %v410_v12, %v410_v12 }
  0x12   :  { %v465_v17 = vpack.c.bf16 %v411_v14, %v410_v12  ;;  %v413_v18 = vadd.f32 -64.5, %v490_v15  ;;  %v168_v21 = vmul.f32 %v411_v14, %v411_v14 }
  0x13   :  { %v239_v22 = vmul.f32 %v412_v16, %v412_v16  ;;  %v311_v27 = vmul.f32 %v412_v16, %v410_v12 }
  0x14   :  { %466 = vmatpush3.bf16.xpose.msra.mxu0 %v465_v17  ;;  %v468_v19 = vpack.c.bf16 %v413_v18, %v412_v16  ;;  %v240_v23 = vmul.f32 %v413_v18, %v413_v18  ;;  %v471_v24 = vpack.c.bf16 %v168_v21, %v167_v20  ;;  %v312_v28 = vmul.f32 %v413_v18, %v411_v14 }
  0x15   :  { %470 = vmatprep.subr.bf16.mxu0 %v495_v0 }
  0x16   :  { %469 = vmatpush3.bf16.xpose.msra.mxu1 %v468_v19  ;;  %v474_v25 = vpack.c.bf16 %v240_v23, %v239_v22  ;;  %v477_v29 = vpack.c.bf16 %v312_v28, %v311_v27 }
  0x17   :  { %473 = vmatprep.subr.bf16.mxu1 %v495_v0 }
  0x1b   :  { %434 = vmatmul.mubr.f32.vlgmr.msra.gmra.mrb[0].mxu0 %v498_v26 }
  0x1c   :  { %472 = vmatpush3.bf16.xpose.msra.mxu0 %v471_v24  ;;  %447 = vmatprep.mubr.msk.f32.mxu0 %vm496_vm0, %v497_v7 }
  0x1d   :  { %441 = vmatmul.mubr.f32.vlgmr.msra.gmra.mrb[0].mxu1 %v498_v26  ;;  %476 = vmatprep.subr.bf16.mxu0 %v495_v0 }
  0x1e   :  { %475 = vmatpush3.bf16.xpose.msra.mxu1 %v474_v25  ;;  %454 = vmatprep.mubr.msk.f32.mxu1 %vm496_vm0, %v497_v7 }
  0x23   :  { %448 = vmatmul.mubr.f32.vlgmr.msra.gmra.mrb[2].mxu0 %v498_v26 }
  0x24   :  { %478 = vmatpush3.bf16.xpose.msra.mxu0 %v477_v29  ;;  %461 = vmatprep.mubr.msk.f32.mxu0 %vm496_vm0, %v497_v7 }
  0x25   :  { %455 = vmatmul.mubr.f32.vlgmr.msra.gmra.mrb[2].mxu1 %v498_v26 }
  0x2b   :  { %462 = vmatmul.mubr.f32.vlgmr.msra.gmra.mrb[4].mxu0 %v498_v26 }
  0xee   :  { %v93_v30 = vpop.f32.mrb[0].mxu0 }
  0xef   :  { %v435_v31 = vpop.f32.mrb[1].mxu0  ;;  %v386_v33 = vmul.f32 %v93_v30, %v93_v30 }
  0xf0   :  { %v163_v32 = vpop.f32.mrb[0].mxu1 }
  0xf1   :  { %v383_v34 = vmul.f32 %v163_v32, %v93_v30  ;;  %v442_v35 = vpop.f32.mrb[1].mxu1  ;;  %v389_v36 = vmul.f32 %v163_v32, %v163_v32  ;;  %v387_v37 = vmul.f32 0.0078125, %v386_v33 }
  0xf3   :  { %v390_v39 = vmul.f32 0.0078125, %v389_v36  ;;  %v384_v46 = vmul.f32 0.0078125, %v383_v34 }
  0xf6   :  { %v235_v38 = vpop.f32.mrb[2].mxu0 }
  0xf7   :  { %v388_v40 = vsub.f32 %v235_v38, %v387_v37  ;;  %v449_v41 = vpop.f32.mrb[3].mxu0 }
  0xf8   :  { %v307_v42 = vpop.f32.mrb[2].mxu1 }
  0xf9   :  { %v391_v43 = vsub.f32 %v307_v42, %v390_v39  ;;  %v456_v44 = vpop.f32.mrb[3].mxu1 }
  0xfb   :  { %v392_v45 = vmul.f32 %v391_v43, %v388_v40 }
  0xfd   :  { %v393_v47 = vmax.f32 %v392_v45, 1e-30 }
  0xfe   :  { %v379_v48 = vpop.f32.mrb[4].mxu0 }
  0xff   :  { %491 = vrsqrt.f32 %v393_v47  ;;  %v385_v49 = vsub.f32 %v379_v48, %v384_v46  ;;  %v463_v50 = vpop.f32.mrb[5].mxu0  ;;  %vm396_vm1 = vcmp.eq.f32.partialorder %v393_v47, inf  ;;  %v399_v53 = vand.u32 2147483648, %v393_v47 }
 0x100   :  { %vm398_vm2 = vcmp.eq.f32.partialorder %v393_v47, 0.0 }
 0x109   :  { %v492_v51 = vpop.eup %491 }
 0x10a   :  { %v395_v52 = vmul.f32 %v492_v51, %v393_v47 }
 0x10c   :  { %v397_v54 = vsel %vm396_vm1, %v393_v47, %v395_v52 }
 0x10d   :  { %v400_v55 = vsel %vm398_vm2, %v399_v53, %v397_v54 }
 0x10e   :  { %493 = vrcp.f32 %v400_v55 }
 0x118   :  { %v494_v56 = vpop.eup %493 }
 0x119   :  { %v402_v57 = vmul.f32 %v494_v56, %v385_v49 }
 0x11b   :  { %v403_v58 = vsub.f32 1.0, %v402_v57 }
 0x11d   :  { %405 = vst.msk [vmem:[%s536_s2] sm:$0x1] %vm404_vm3, %v403_v58 }

</bundles_post_ra>
